<compile_context>
chip_gen: v7x
topology: tpu7x:2x2x1
jax: 0.10.0
libtpu: 0.0.40
codegen_flags: <defaults>
</compile_context>

<pallas_src>
import math
from functools import partial

import jax
import jax.numpy as jnp
from jax.experimental import pallas as pl
from jax.experimental.pallas import tpu as pltpu


# ---------------------------------------------------------------------------
# Small helpers: legal tile picking and VMEM sizing.
# ---------------------------------------------------------------------------
def _pick_tile(dim, target, quantum):
    """Largest divisor of `dim` that is <= target and a multiple of `quantum`,
    else the full dim (full dims are always layout-legal)."""
    if dim <= target:
        return dim
    t = (target // quantum) * quantum
    while t >= quantum:
        if dim % t == 0:
            return t
        t -= quantum
    return dim


def _pad_bytes(shape, itemsize):
    """Bytes of a VMEM tile padded to the (8, 128) layout on the last 2 dims."""
    if len(shape) == 1:
        r, c = 1, shape[0]
        lead = 1
    else:
        r, c = shape[-2], shape[-1]
        lead = 1
        for d in shape[:-2]:
            lead *= d
    return lead * (-(-r // 8) * 8) * (-(-c // 128) * 128) * itemsize


# ---------------------------------------------------------------------------
# Conv1D (rf=1): y = x @ w + b.
# Tiled over (M, N, K); K is a reduction axis ("arbitrary", innermost) with an
# f32 accumulator scratch, so VMEM is constant regardless of nx.
# ---------------------------------------------------------------------------
def _conv1d_kernel(x_ref, w_ref, b_ref, o_ref, acc_ref):
    k = pl.program_id(2)

    @pl.when(k == 0)
    def _init():
        acc_ref[...] = jnp.zeros_like(acc_ref)

    acc_ref[...] += jnp.dot(x_ref[...], w_ref[...],
                            preferred_element_type=jnp.float32)

    @pl.when(k == pl.num_programs(2) - 1)
    def _finalize():
        o_ref[...] = (acc_ref[...] + b_ref[...]).astype(o_ref.dtype)


def conv1d(x2d, w, b, *, tm=512, tn=512, tk=512):
    M, K = x2d.shape
    N = w.shape[1]
    # TM as large as reasonable -> fewer weight re-streams (v5e HBM-bound path).
    TM = _pick_tile(M, tm, 8)
    TN = _pick_tile(N, tn, 128)
    TK = _pick_tile(K, tk, 128)
    grid = (M // TM, N // TN, K // TK)

    isz = x2d.dtype.itemsize
    osz = x2d.dtype.itemsize
    est = (2 * (_pad_bytes((TM, TK), isz) + _pad_bytes((TK, TN), isz)
                + _pad_bytes((1, TN), isz) + _pad_bytes((TM, TN), osz))
           + _pad_bytes((TM, TN), 4))
    vmem_limit = int(min(64 * 2**20, max(2 * est, 32 * 2**20)))

    cost = pl.CostEstimate(
        flops=2 * M * K * N,
        transcendentals=0,
        bytes_accessed=(M * K * (N // TN) + K * N * (M // TM) + M * N + N) * isz,
    )
    return pl.pallas_call(
        _conv1d_kernel,
        out_shape=jax.ShapeDtypeStruct((M, N), x2d.dtype),
        grid=grid,
        in_specs=[
            pl.BlockSpec((TM, TK), lambda i, j, k: (i, k)),
            pl.BlockSpec((TK, TN), lambda i, j, k: (k, j)),
            pl.BlockSpec((1, TN), lambda i, j, k: (0, j)),
        ],
        out_specs=pl.BlockSpec((TM, TN), lambda i, j, k: (i, j)),
        scratch_shapes=[pltpu.VMEM((TM, TN), jnp.float32)],
        compiler_params=pltpu.CompilerParams(
            dimension_semantics=("parallel", "parallel", "arbitrary"),
            vmem_limit_bytes=vmem_limit),
        cost_estimate=cost,
    )(x2d, w, b.reshape(1, N))


# ---------------------------------------------------------------------------
# Flash-style masked attention.
# Grid: (batch, q-tile, kv-tile); kv-tile is the reduction axis ("arbitrary").
# Per-head online-softmax state lives in VMEM scratch; the rns mask is built
# in-kernel from two small tiled views of rns_indices.
# ---------------------------------------------------------------------------
def _attn_kernel(rq_ref, rk_ref, q_ref, k_ref, v_ref, o_ref,
                 m_scr, l_scr, acc_scr, *, n_head, scale):
    ki = pl.program_id(2)
    tq = q_ref.shape[1]
    tkv = k_ref.shape[1]
    nx = q_ref.shape[2]
    hd = nx // n_head
    topk = rq_ref.shape[2]

    @pl.when(ki == 0)
    def _init():
        m_scr[...] = jnp.full(m_scr.shape, -jnp.inf, dtype=m_scr.dtype)
        l_scr[...] = jnp.zeros_like(l_scr)
        acc_scr[...] = jnp.zeros_like(acc_scr)

    # --- rns mask for this (q-tile, kv-tile), shared across all heads --------
    # mask[i, j] = (j in rns_indices[b, i]) AND (i in rns_indices[b, j])
    rq = rq_ref[0]                                          # (TQ,  topk) int32
    rk = rk_ref[0]                                          # (topk, TKV) int32
    j_ids = ki * tkv + jax.lax.broadcasted_iota(jnp.int32, (tq, tkv), 1)
    i_ids = pl.program_id(1) * tq + jax.lax.broadcasted_iota(jnp.int32, (tq, tkv), 0)
    a_m = rq[:, 0:1] == j_ids
    b_m = rk[0:1, :] == i_ids
    for t in range(1, topk):                                # topk small & static
        a_m = jnp.logical_or(a_m, rq[:, t:t + 1] == j_ids)
        b_m = jnp.logical_or(b_m, rk[t:t + 1, :] == i_ids)
    mask = jnp.logical_and(a_m, b_m)                        # (TQ, TKV) bool

    q = q_ref[0]                                            # (TQ,  nx)
    k = k_ref[0]                                            # (TKV, nx)
    v = v_ref[0]                                            # (TKV, nx)
    if scale:
        # Fold 1/sqrt(hd) into q (TQ*nx mults) instead of scaling the scores.
        q = q * jnp.asarray(1.0 / math.sqrt(hd), dtype=q.dtype)

    # Per-head loop (n_head is small & static).  Heads are column blocks of the
    # fused qkv tensor, so q/k/v slices are static lane slices and the only
    # lane relayout is the single merge-heads concatenate at finalize.
    for h in range(n_head):
        lo = h * hd
        qh = q[:, lo:lo + hd]
        kh = k[:, lo:lo + hd]
        vh = v[:, lo:lo + hd]
        # Contraction over hd; lowers to the MXU transposed-rhs path.
        s = jnp.einsum("qd,kd->qk", qh, kh,
                       preferred_element_type=jnp.float32)  # (TQ, TKV)
        s = jnp.where(mask, s, -1e9)                        # training-branch rns()
        m_prev = m_scr[h]                                   # (TQ, 1)
        m_new = jnp.maximum(m_prev, jnp.max(s, axis=-1, keepdims=True))
        alpha = jnp.exp(m_prev - m_new)
        p = jnp.exp(s - m_new)                              # (TQ, TKV)
        l_scr[h] = alpha * l_scr[h] + jnp.sum(p, axis=-1, keepdims=True)
        acc_scr[h] = alpha * acc_scr[h] + jnp.dot(
            p.astype(vh.dtype), vh, preferred_element_type=jnp.float32)
        m_scr[h] = m_new

    @pl.when(ki == pl.num_programs(2) - 1)
    def _finalize():
        # Exact divide (cheap relative to the matmuls; keeps f32 parity).
        outs = [acc_scr[h] / l_scr[h] for h in range(n_head)]
        # merge_heads: single lane-dense (TQ, nx) store, once per (b, q-tile).
        o_ref[0] = jnp.concatenate(outs, axis=-1).astype(o_ref.dtype)


def masked_attention(qkv, rns_indices, *, n_head, scale, tq=256, tkv=512):
    bs, seq, three_nx = qkv.shape
    nx = three_nx // 3
    hd = nx // n_head
    topk = rns_indices.shape[2]

    TQ = _pick_tile(seq, tq, 8)
    TKV = _pick_tile(seq, tkv, 128)
    nq = seq // TQ
    nkv = seq // TKV
    kern = partial(_attn_kernel, n_head=n_head, scale=scale)

    rns_q = rns_indices.astype(jnp.int32)                   # (bs, seq, topk)
    rns_kT = jnp.swapaxes(rns_q, 1, 2)                      # (bs, topk, seq)

    isz = qkv.dtype.itemsize
    blk = (_pad_bytes((TQ, nx), isz) + 2 * _pad_bytes((TKV, nx), isz)
           + _pad_bytes((TQ, nx), isz)
           + _pad_bytes((TQ, topk), 4) + _pad_bytes((topk, TKV), 4))
    scr = 2 * _pad_bytes((n_head, TQ, 1), 4) + _pad_bytes((n_head, TQ, hd), 4)
    vmem_limit = int(min(64 * 2**20, max(2 * (2 * blk + scr), 32 * 2**20)))

    cost = pl.CostEstimate(
        flops=4 * bs * n_head * seq * seq * hd,              # q@k^T and p@v
        transcendentals=bs * n_head * seq * seq,             # exp
        bytes_accessed=bs * (2 * seq * nx + nq * 2 * seq * nx) * isz
        + 2 * bs * seq * topk * 4,
    )

    rq_spec = pl.BlockSpec((1, TQ, topk), lambda b, qi, ki: (b, qi, 0))
    rk_spec = pl.BlockSpec((1, topk, TKV), lambda b, qi, ki: (b, 0, ki))
    out_spec = pl.BlockSpec((1, TQ, nx), lambda b, qi, ki: (b, qi, 0))

    if nx % 128 == 0:
        # Preferred path: slice q/k/v column blocks straight out of the fused
        # qkv tensor via the index_map (block units of nx) -> zero extra HBM
        # traffic for split_heads.
        in_specs = [
            rq_spec, rk_spec,
            pl.BlockSpec((1, TQ, nx), lambda b, qi, ki: (b, qi, 0)),   # q cols
            pl.BlockSpec((1, TKV, nx), lambda b, qi, ki: (b, ki, 1)),  # k cols
            pl.BlockSpec((1, TKV, nx), lambda b, qi, ki: (b, ki, 2)),  # v cols
        ]
        args = (rns_q, rns_kT, qkv, qkv, qkv)
    else:
        # Fallback when nx is not a multiple of 128 (lane rule): split in the
        # wrapper so every block's last dim equals the full array dim.
        q, k, v = jnp.split(qkv, 3, axis=2)
        in_specs = [
            rq_spec, rk_spec,
            pl.BlockSpec((1, TQ, nx), lambda b, qi, ki: (b, qi, 0)),
            pl.BlockSpec((1, TKV, nx), lambda b, qi, ki: (b, ki, 0)),
            pl.BlockSpec((1, TKV, nx), lambda b, qi, ki: (b, ki, 0)),
        ]
        args = (rns_q, rns_kT, q, k, v)

    return pl.pallas_call(
        kern,
        out_shape=jax.ShapeDtypeStruct((bs, seq, nx), qkv.dtype),
        grid=(bs, nq, nkv),
        in_specs=in_specs,
        out_specs=out_spec,
        scratch_shapes=[
            pltpu.VMEM((n_head, TQ, 1), jnp.float32),   # running max
            pltpu.VMEM((n_head, TQ, 1), jnp.float32),   # running sum
            pltpu.VMEM((n_head, TQ, hd), jnp.float32),  # running output
        ],
        compiler_params=pltpu.CompilerParams(
            dimension_semantics=("parallel", "parallel", "arbitrary"),
            vmem_limit_bytes=vmem_limit),
        cost_estimate=cost,
    )(*args)


# ---------------------------------------------------------------------------
# Full Attention.forward
# ---------------------------------------------------------------------------
def attention_forward(x, rns_indices, params, *, n_head, scale=False,
                      num_landmark=None, tq=256, tkv=512,
                      conv_tm=512, conv_tn=512, conv_tk=512):
    del num_landmark  # dead code in the reference (_attn overwrites w with q @ k)
    bs, seq, nx = x.shape

    # c_attn: fused qkv projection (no split / transpose round-trips afterwards)
    qkv = conv1d(x.reshape(bs * seq, nx), params["w_attn"], params["b_attn"],
                 tm=conv_tm, tn=conv_tn, tk=conv_tk)
    qkv = qkv.reshape(bs, seq, 3 * nx)

    a = masked_attention(qkv, rns_indices, n_head=n_head, scale=scale,
                         tq=tq, tkv=tkv)                    # (bs, seq, nx)

    # merge_heads already happened in-kernel; c_proj
    a = conv1d(a.reshape(bs * seq, nx), params["w_proj"], params["b_proj"],
               tm=conv_tm, tn=conv_tn, tk=conv_tk)
    # resid_dropout with p=0.0 -> identity
    return a.reshape(bs, seq, nx)


# ---------------------------------------------------------------------------
# Pure-JAX reference (for correctness checking of the Pallas kernels).
# ---------------------------------------------------------------------------
def ref_forward(x, rns_indices, params, n_head, scale):
    bs, seq, nx = x.shape
    hd = nx // n_head
    qkv = x.reshape(-1, nx) @ params["w_attn"] + params["b_attn"]
    qkv = qkv.reshape(bs, seq, 3 * nx)
    q, k, v = jnp.split(qkv, 3, axis=2)
    q = q.reshape(bs, seq, n_head, hd).transpose(0, 2, 1, 3)
    k = k.reshape(bs, seq, n_head, hd).transpose(0, 2, 1, 3)
    v = v.reshape(bs, seq, n_head, hd).transpose(0, 2, 1, 3)
    w = jnp.einsum("bhqd,bhkd->bhqk", q, k)
    if scale:
        w = w / math.sqrt(hd)
    oh = (jax.nn.one_hot(rns_indices, seq, dtype=jnp.float32).sum(axis=2) > 0)
    mask = oh.astype(jnp.float32)[:, None, :, :]            # (bs, 1, seq, seq)
    mask = mask * jnp.swapaxes(mask, 2, 3)
    w = w * mask + (-1e9) * (1.0 - mask)
    p = jax.nn.softmax(w, axis=-1)
    a = jnp.einsum("bhqk,bhkd->bhqd", p, v)
    a = a.transpose(0, 2, 1, 3).reshape(bs * seq, nx)
    a = a @ params["w_proj"] + params["b_proj"]
    return a.reshape(bs, seq, nx)


if __name__ == "__main__":
    key = jax.random.PRNGKey(0)
    # Sizes chosen so the new multi-tile code paths are exercised:
    #   attention grid (bs, nq, nkv) = (2, 2, 2)  [flash init/step/finalize]
    #   conv1d grid (M, N, K tiles)  = (4, 6, 2)  [K-reduction accumulator]
    bs, seq, nx, n_head, topk = 2, 256, 256, 4, 4
    num_landmark = 4

    k1, k2, k3, k4 = jax.random.split(key, 4)
    x = jax.random.normal(k1, (bs, seq, nx), dtype=jnp.float32)
    rns_indices = jax.random.randint(k2, (bs, seq, topk), 0, seq, dtype=jnp.int32)

    # Deterministic parameter init matching Conv1D.__init__ (normal std=0.02, zero bias)
    params = {
        "w_attn": 0.02 * jax.random.normal(k3, (nx, 3 * nx), dtype=jnp.float32),
        "b_attn": jnp.zeros((3 * nx,), dtype=jnp.float32),
        "w_proj": 0.02 * jax.random.normal(k4, (nx, nx), dtype=jnp.float32),
        "b_proj": jnp.zeros((nx,), dtype=jnp.float32),
    }

    out = attention_forward(x, rns_indices, params, n_head=n_head, scale=False,
                            num_landmark=num_landmark,
                            tq=128, tkv=128, conv_tm=128, conv_tn=128, conv_tk=128)
    out = jax.block_until_ready(out)

    ref = ref_forward(x, rns_indices, params, n_head, False)
    assert out.shape == (bs, seq, nx)
    assert jnp.allclose(out, ref, atol=1e-3, rtol=1e-3), "mismatch vs JAX reference"
    print("KERNEL_OK")
</pallas_src>

<mosaic_0001>
module attributes {stable_mosaic.version = 11 : i64} {
  func.func @_conv1d_kernel(%arg0: i32, %arg1: i32, %arg2: i32, %arg3: memref<128x128xf32, #tpu.memory_space<vmem>>, %arg4: memref<128x128xf32, #tpu.memory_space<vmem>>, %arg5: memref<1x128xf32, #tpu.memory_space<vmem>>, %arg6: memref<128x128xf32, #tpu.memory_space<vmem>>, %arg7: memref<128x128xf32, #tpu.memory_space<vmem>>) attributes {dimension_semantics = [#tpu.dimension_semantics<parallel>, #tpu.dimension_semantics<parallel>, #tpu.dimension_semantics<arbitrary>], iteration_bounds = array<i64: 4, 6, 2>, scalar_prefetch = 0 : i64, scratch_operands = 1 : i64, tpu.core_type = #tpu.core_type<tc>, window_params = [{transform_indices = @transform_0, window_bounds = array<i64: 128, 128>}, {transform_indices = @transform_1, window_bounds = array<i64: 128, 128>}, {transform_indices = @transform_2, window_bounds = array<i64: 1, 128>}, {transform_indices = @transform_3, window_bounds = array<i64: 128, 128>}]} {
    %c0_i32 = arith.constant 0 : i32
    %0 = arith.cmpi eq, %arg2, %c0_i32 : i32
    %1 = arith.extui %0 : i1 to i32
    %c0_i32_0 = arith.constant 0 : i32
    %2 = arith.cmpi ne, %1, %c0_i32_0 : i32
    scf.if %2 {
      %cst_9 = arith.constant 0.000000e+00 : f32
      %12 = vector.broadcast %cst_9 : f32 to vector<128x128xf32>
      %c0_10 = arith.constant 0 : index
      %c0_11 = arith.constant 0 : index
      %13 = vector.load %arg7[%c0_10, %c0_11] : memref<128x128xf32, #tpu.memory_space<vmem>>, vector<128x128xf32>
      tpu.vector_store %arg7[%c0_10, %c0_11], %12 {strides = array<i32>} : memref<128x128xf32, #tpu.memory_space<vmem>>, vector<128x128xf32>,
    } else {
    }
    %c0 = arith.constant 0 : index
    %c0_1 = arith.constant 0 : index
    %3 = vector.load %arg7[%c0, %c0_1] : memref<128x128xf32, #tpu.memory_space<vmem>>, vector<128x128xf32>
    %c0_2 = arith.constant 0 : index
    %c0_3 = arith.constant 0 : index
    %4 = vector.load %arg3[%c0_2, %c0_3] : memref<128x128xf32, #tpu.memory_space<vmem>>, vector<128x128xf32>
    %c0_4 = arith.constant 0 : index
    %c0_5 = arith.constant 0 : index
    %5 = vector.load %arg4[%c0_4, %c0_5] : memref<128x128xf32, #tpu.memory_space<vmem>>, vector<128x128xf32>
    %cst = arith.constant dense<0.000000e+00> : vector<128x128xf32>
    %6 = tpu.matmul %4, %5, %cst {dimension_numbers = #tpu.dot_dimension_numbers<[1], [0], [0], [1], [0, 0, 1, 1], [], []>} : vector<128x128xf32>, vector<128x128xf32>, vector<128x128xf32> -> vector<128x128xf32>
    %7 = arith.addf %3, %6 : vector<128x128xf32>
    %c0_6 = arith.constant 0 : index
    %c0_7 = arith.constant 0 : index
    %8 = vector.load %arg7[%c0_6, %c0_7] : memref<128x128xf32, #tpu.memory_space<vmem>>, vector<128x128xf32>
    tpu.vector_store %arg7[%c0_6, %c0_7], %7 {strides = array<i32>} : memref<128x128xf32, #tpu.memory_space<vmem>>, vector<128x128xf32>,
    %c1_i32 = arith.constant 1 : i32
    %9 = arith.cmpi eq, %arg2, %c1_i32 : i32
    %10 = arith.extui %9 : i1 to i32
    %c0_i32_8 = arith.constant 0 : i32
    %11 = arith.cmpi ne, %10, %c0_i32_8 : i32
    scf.if %11 {
      %c0_9 = arith.constant 0 : index
      %c0_10 = arith.constant 0 : index
      %12 = vector.load %arg7[%c0_9, %c0_10] : memref<128x128xf32, #tpu.memory_space<vmem>>, vector<128x128xf32>
      %c0_11 = arith.constant 0 : index
      %c0_12 = arith.constant 0 : index
      %13 = vector.load %arg5[%c0_11, %c0_12] : memref<1x128xf32, #tpu.memory_space<vmem>>, vector<1x128xf32>
      %14 = vector.broadcast %13 : vector<1x128xf32> to vector<128x128xf32>
      %15 = arith.addf %12, %14 : vector<128x128xf32>
      %c0_13 = arith.constant 0 : index
      %c0_14 = arith.constant 0 : index
      %16 = vector.load %arg6[%c0_13, %c0_14] : memref<128x128xf32, #tpu.memory_space<vmem>>, vector<128x128xf32>
      tpu.vector_store %arg6[%c0_13, %c0_14], %15 {strides = array<i32>} : memref<128x128xf32, #tpu.memory_space<vmem>>, vector<128x128xf32>,
    } else {
    }
    return
  }
  func.func @transform_0(%arg0: i32, %arg1: i32, %arg2: i32) -> (i32, i32) {
    %c0_i32 = arith.constant 0 : i32
    return %arg0, %arg2 : i32, i32
  }
  func.func @transform_1(%arg0: i32, %arg1: i32, %arg2: i32) -> (i32, i32) {
    %c0_i32 = arith.constant 0 : i32
    return %arg2, %arg1 : i32, i32
  }
  func.func @transform_2(%arg0: i32, %arg1: i32, %arg2: i32) -> (i32, i32) {
    %c0_i32 = arith.constant 0 : i32
    %c0_i32_0 = arith.constant 0 : i32
    return %c0_i32, %arg1 : i32, i32
  }
  func.func @transform_3(%arg0: i32, %arg1: i32, %arg2: i32) -> (i32, i32) {
    %c0_i32 = arith.constant 0 : i32
    return %arg0, %arg1 : i32, i32
  }
}

</mosaic_0001>

<bundles_post_ra>
// kernel: tpu_custom_call.1
= control target key start
LH: loop header
LB: loop body
LE: loop exit
PB: predicated region body
PF: predicated region fallthrough
CT: control target
= control target key end

     0   :  { %s1949_s0 = inlined_call_operand.hbm [shape: f32[512,256], index: 0, kind: input, shape index: {}]   ;;  %s1950_s1 = inlined_call_operand.hbm [shape: f32[256,768], index: 1, kind: input, shape index: {}]   ;;  %s1951_s2 = inlined_call_operand.hbm [shape: f32[1,768], index: 2, kind: input, shape index: {}]   ;;  %s1952_s3 = inlined_call_operand.hbm [shape: f32[512,768], index: 3, kind: output, shape index: {}]  }
   0x1   :  { %1973 = sst [smem:[#allocation28_spill]] %s1949_s0 }
   0x2   :  { %1974 = sst [smem:[#allocation29_spill]] %s1950_s1 }
   0x3   :  { %1975 = sst [smem:[#allocation30_spill]] %s1951_s2 }
   0x4   :  { %1976 = sst [smem:[#allocation31_spill]] %s1952_s3 }
   0x5   :  { %8 = vsyncpa [#allocation4], 0 }
   0x6   :  { %10 = vsyncpa [#allocation4 + $0x1], 0 }
   0x7   :  { %11 = vsyncpa [#allocation7], 0 }
   0x8   :  { %13 = vsyncpa [#allocation7 + $0x1], 0 }
   0x9   :  { %14 = vsyncpa [#allocation5], 0 }
   0xa   :  { %16 = vsyncpa [#allocation5 + $0x1], 0  ;;  %s1415_s12 = smov 0   ;;  %s1417_s13 = smov 0  }
   0xb   :  { %s1419_s14 = smov 0   ;;  %s1421_s15 = smov 0  }
   0xc   :  { %s1423_s16 = smov 0   ;;  %s1425_s17 = smov 0  }
   0xd   :  { %s1427_s18 = smov 0   ;;  %s1429_s19 = smov 0  }
   0xe   :  { %s1431_s20 = smov 0   ;;  %s1433_s21 = smov 0  }
   0xf   :  { %s1435_s22 = smov 0   ;;  %s1437_s23 = smov 0  }
  0x10   :  { %s1439_s24 = smov 0   ;;  %s1441_s25 = smov 0  }
  0x11   :  { %s1443_s26 = smov 0   ;;  %s1445_s27 = smov 0  }
  0x12   :  { %s1447_s28 = smov 0   ;;  %s1449_s29 = smov 0  }
  0x13   :  { %s1451_s30 = smov 0  }
  0x14 LB: > { %1977 = sst [smem:[#allocation14_spill]] %s1309_s12  ;;  %s34_s4 = sadd.s32 1, %s1369_s27  ;;  %s1381_s30 = sphi %s1451_s30, %s22_s30   ;;  %s1377_s29 = sphi %s1449_s29, %s2061_s29   ;;  %s1373_s28 = sphi %s1447_s28, %s2060_s28   ;;  %s1369_s27 = sphi %s1445_s27, %s2059_s27   ;;  %s1365_s26 = sphi %s1443_s26, %s2058_s26   ;;  %s1361_s25 = sphi %s1441_s25, %s2057_s25   ;;  %s1357_s24 = sphi %s1439_s24, %s2056_s24   ;;  %s1353_s23 = sphi %s1437_s23, %s2055_s23   ;;  %s1349_s22 = sphi %s1435_s22, %s2054_s22   ;;  %s1345_s21 = sphi %s1433_s21, %s2053_s21   ;;  %s1341_s20 = sphi %s1431_s20, %s2043_s20   ;;  %s1337_s19 = sphi %s1429_s19, %s2042_s19   ;;  %s1333_s18 = sphi %s1427_s18, %s2041_s18   ;;  %s1329_s17 = sphi %s1425_s17, %s2052_s17   ;;  %s1325_s16 = sphi %s1423_s16, %s2051_s16   ;;  %s1321_s15 = sphi %s1421_s15, %s2040_s15   ;;  %s1317_s14 = sphi %s1419_s14, %s2049_s14   ;;  %s1313_s13 = sphi %s1417_s13, %s2047_s13   ;;  %s1309_s12 = sphi %s1415_s12, %s2039_s12  }
  0x15   : > { %1978 = sst [smem:[#allocation15_spill]] %s1313_s13  ;;  %s37_s5 = sadd.s32 1, %s1373_s28 }
  0x16   : > { %1979 = sst [smem:[#allocation16_spill]] %s1321_s15  ;;  %p35_p0 = scmp.ge.s32.totalorder %s34_s4, 2 }
  0x17   : > { %1980 = sst [smem:[#allocation17_spill]] %s1325_s16  ;;  %p1962_p1 = scmp.eq.s32.totalorder %s1381_s30, 0 }
  0x18   : > { %1981 = sst [smem:[#allocation18_spill]] %s1333_s18  ;;  %s78_s6 = sadd.s32 1, %s1341_s20 }
  0x19   : > { %1982 = sst [smem:[#allocation19_spill]] %s1337_s19  ;;  %p85_p2 = scmp.ne.s32.totalorder %s1341_s20, %s1337_s19 }
  0x1a   : > { %1983 = sst [smem:[#allocation20_spill]] %s1341_s20  ;;  %s2063_s4 = smov (%p35_p0, %s34_s4), 0 }
  0x1b   : > { %1984 = sst [smem:[#allocation21_spill]] %s1357_s24  ;;  %s2065_s5 = smov (!%p35_p0, %s37_s5), %s1373_s28 }
  0x1c   : > { %1985 = sst [smem:[#allocation22_spill]] %s1361_s25  ;;  %s1523_s7 = ssub.s32 %s1369_s27, %s2063_s4 }
  0x1d   : > { %1986 = sst [smem:[#allocation23_spill]] %s1365_s26  ;;  %p1527_p3 = por %p85_p2, %p1962_p1 }
  0x1e   : > { %1987 = sst [smem:[#allocation24_spill]] %s2063_s4  ;;  %p1963_p4 = scmp.ge.s32.totalorder %s2065_s5, 6 }
  0x1f   : > { %p1961_p6 = scmp.lt.s32.totalorder %s1381_s30, 48  ;;  %s192_s11 = sand.u32 1, %s1381_s30  }
  0x20   : > { %s1538_s9 = scalar_select %p1963_p4, 0, %s2065_s5  }
  0x21   : > { %s194_s3 = sand.u32 1, %s1341_s20   ;;  %s911_s26 = smul.u32 96, %s1369_s27 }
  0x22   : > { %1989 = sst [smem:[#allocation25_spill]] %s1538_s9  ;;  %s1542_s10 = ssub.s32 %s1373_s28, %s1538_s9 }
  0x23   : > { %s75_s4 = sor.u32 %s1542_s10, %s1523_s7  ;;  %s756_s25 = sshll.u32 %s194_s3, 7 }
  0x24   : > { %p76_p7 = scmp.eq.s32.totalorder %s75_s4, 0  ;;  %s202_s2 = sadd.s32 %s1373_s28, %s911_s26 }
  0x25   : > { %s759_s12 = sshll.u32 %s202_s2, 7  ;;  %s196_s13 = scalar_lea.vmem [#allocation6], %s756_s25 }
  0x26   : > { %s1550_s24 = scalar_select %p76_p7, %s1341_s20, %s78_s6  }
  0x27   : > { %s205_s15 = sshll.u32 %s196_s13, 4  ;;  %s1991_s1 = sld [smem:[#allocation29_spill]]  ;;  %s1558_s15 = int_to_ptr.vmem [resolvable:$true] %s205_s15 }
  0x28   : > { %1990 = sst [smem:[#allocation26_spill]] %s1550_s24  ;;  %p1564_p8 = pnand %p1961_p6, %p1527_p3 }
  0x29   : > { %p230_p10 = scmp.lt.s32.totalorder %s1381_s30, 49  ;;  %s1570_s2 = scalar_lea.sflag [#allocation7], %s192_s11 }
  0x2a   : > { %p1099_p12 = pneg %p1564_p8 }
  0x2d   : > { %s1556_s19 = scalar_lea.hbm %s1991_s1, %s759_s12  ;;  %s1102_s18 = scalar_lea.hbm %s1991_s1, 24576 }
  0x2e   : > { %s1097_s12 = scalar_lea.hbm %s1556_s19, 2048  ;;  %p1103_p2 = scmp.lt.u32.totalorder %s1556_s19, %s1991_s1 }
  0x2f   : > { %p1098_p11 = scmp.ne.s32.totalorder %s1556_s19, %s1097_s12  ;;  %p1104_p3 = scmp.lt.u32.totalorder %s1102_s18, %s1097_s12 }
  0x30   : > { %p1106_p5 = scmp.lt.u32.totalorder %s1097_s12, %s1556_s19 }
  0x31   : > { %p1100_p13 = pnand %p1099_p12, %p1098_p11  ;;  %p1105_p7 = por %p1104_p3, %p1103_p2 }
  0x33   : > { %p1101_p0 = pneg %p1100_p13  ;;  %p1107_p6 = por %p1106_p5, %p1105_p7 }
  0x35   : > { %p1108_p1 = pnand %p1107_p6, %p1101_p0 }
  0x37   : > { %1111 = shalt.err (!%p1108_p1)
}
  0x38   : > { %s1112_s4 = scalar_lea.vmem %s1558_s15, 2048  ;;  %s1383_s6 = smov [#allocation6]  }
  0x39   : > { %p1113_p11 = scmp.ne.s32.totalorder %s1558_s15, %s1112_s4  ;;  %s1117_s8 = sshll.u32 %s1383_s6, 4  ;;  %s1118_s8 = int_to_ptr.vmem [resolvable:$false] %s1117_s8 }
  0x3a   : > { %s1119_s11 = scalar_lea.vmem %s1118_s8, 4096  ;;  %p1120_p9 = scmp.lt.s32.totalorder %s1558_s15, %s1118_s8 }
  0x3b   : > { %p1115_p13 = pnand %p1113_p11, %p1099_p12  ;;  %p1121_p2 = scmp.lt.s32.totalorder %s1119_s11, %s1112_s4 }
  0x3d   : > { %p1116_p4 = pneg %p1115_p13  ;;  %p1122_p3 = por %p1121_p2, %p1120_p9 }
  0x3f   : > { %p1123_p5 = pnand %p1122_p3, %p1116_p4 }
  0x41   : > { %1126 = shalt.err (!%p1123_p5)
}
  0x42   : > { %s1384_s12 = smov 768   ;;  %s1964_s13 = smov 128  }
  0x43   : > { %s1965_s16 = smov 8   ;;  %p1993_p1 = scmp.ge.s32.totalorder %s1381_s30, 1 }
  0x44   : > { %927 = dma.hbm_to_vmem [thread:$0]  (!%p1564_p8), %s1556_s19, 2048, %s1558_s15, %s1570_s2, %s1384_s12, %s1964_s13, %s1965_s16  }
  0x45   : > { %p1604_p4 = pnand %p1993_p1, %p230_p10  ;;  %s41_s25 = sadd.s32 1, %s1377_s29 }
  0x46   : > { %s50_s26 = sadd.s32 1, %s1353_s23  ;;  %p1995_p6 = scmp.ge.s32.totalorder %s2065_s5, 6 }
  0x47   : > { %s1994_s18 = scalar_select %p1604_p4, 1, 0 }
  0x48   : > { %s2067_s25 = smov (!%p1995_p6, %s41_s25), %s1377_s29  ;;  %p57_p9 = scmp.ne.s32.totalorder %s1353_s23, %s1349_s22 }
  0x49   : > { %p43_p0 = scmp.ge.s32.totalorder %s2067_s25, 4  ;;  %s132_s3 = sadd.s32 1, %s1317_s14 }
  0x4a   : > { %p1996_p7 = scmp.eq.s32.totalorder %s1381_s30, 0  ;;  %s169_s19 = sand.u32 1, %s1353_s23  }
  0x4b   : > { %s2069_s25 = smov (%p43_p0, %s2067_s25), 0  ;;  %s752_s5 = sshll.u32 %s169_s19, 7 }
  0x4c   : > { %p1620_p8 = por %p1996_p7, %p57_p9  ;;  %1998 = sst [smem:[#allocation27_spill]] %s2069_s25 }
  0x4d   : > { %s45_s4 = ssub.s32 %s1377_s29, %s2069_s25  ;;  %s774_s11 = sshll.u32 %s1377_s29, 5 }
  0x4e   : > { %s47_s6 = sor.u32 %s1523_s7, %s45_s4  ;;  %s129_s8 = sor.u32 %s1542_s10, %s45_s4 }
  0x4f   : > { %p48_p10 = scmp.eq.s32.totalorder %s47_s6, 0  ;;  %p130_p11 = scmp.eq.s32.totalorder %s129_s8, 0 }
  0x50   : > { %s173_s12 = scalar_lea.vmem [#allocation3], %s752_s5  ;;  %s179_s9 = sadd.s32 %s1369_s27, %s774_s11 }
  0x51   : > { %s182_s13 = sshll.u32 %s173_s12, 4  ;;  %s755_s24 = sshll.u32 %s179_s9, 7  ;;  %s1639_s13 = int_to_ptr.vmem [resolvable:$true] %s182_s13 }
  0x52   : > { %s1633_s16 = scalar_select %p48_p10, %s1353_s23, %s50_s26  }
  0x53   : > { %s1636_s1 = scalar_select %p130_p11, %s1317_s14, %s132_s3  }
  0x54   : > { %p1999_p13 = scmp.lt.s32.totalorder %s1381_s30, 48  ;;  %s2001_s0 = sld [smem:[#allocation28_spill]] }
  0x55   : > { %s1654_s26 = scalar_lea.sflag [#allocation4], %s169_s19 }
  0x56   : > { %p1645_p2 = pnand %p1999_p13, %p1620_p8 }
  0x58   : > { %p1129_p5 = pneg %p1645_p2 }
  0x5a   : > { %s1652_s5 = scalar_lea.hbm %s2001_s0, %s755_s24  ;;  %s1132_s6 = scalar_lea.hbm %s2001_s0, 16384 }
  0x5b   : > { %s1127_s9 = scalar_lea.hbm %s1652_s5, 2048  ;;  %p1133_p9 = scmp.lt.u32.totalorder %s1652_s5, %s2001_s0 }
  0x5c   : > { %p1128_p3 = scmp.ne.s32.totalorder %s1652_s5, %s1127_s9  ;;  %p1134_p0 = scmp.lt.u32.totalorder %s1132_s6, %s1127_s9 }
  0x5d   : > { %p1136_p8 = scmp.lt.u32.totalorder %s1127_s9, %s1652_s5 }
  0x5e   : > { %p1130_p1 = pnand %p1129_p5, %p1128_p3  ;;  %p1135_p7 = por %p1134_p0, %p1133_p9 }
  0x60   : > { %p1131_p6 = pneg %p1130_p1  ;;  %p1137_p10 = por %p1136_p8, %p1135_p7 }
  0x62   : > { %p1138_p11 = pnand %p1137_p10, %p1131_p6 }
  0x64   : > { %1141 = shalt.err (!%p1138_p11)
}
  0x65   : > { %s1142_s19 = scalar_lea.vmem %s1639_s13, 2048  ;;  %s1387_s11 = smov [#allocation3]  }
  0x66   : > { %p1143_p13 = scmp.ne.s32.totalorder %s1639_s13, %s1142_s19  ;;  %s1147_s12 = sshll.u32 %s1387_s11, 4  ;;  %s1148_s12 = int_to_ptr.vmem [resolvable:$false] %s1147_s12 }
  0x67   : > { %s1149_s7 = scalar_lea.vmem %s1148_s12, 4096  ;;  %p1150_p12 = scmp.lt.s32.totalorder %s1639_s13, %s1148_s12 }
  0x68   : > { %p1145_p3 = pnand %p1143_p13, %p1129_p5  ;;  %p1151_p9 = scmp.lt.s32.totalorder %s1149_s7, %s1142_s19 }
  0x6a   : > { %p1146_p1 = pneg %p1145_p3  ;;  %p1152_p0 = por %p1151_p9, %p1150_p12 }
  0x6c   : > { %p1153_p7 = pnand %p1152_p0, %p1146_p1 }
  0x6e   : > { %1156 = shalt.err (!%p1153_p7)
}
  0x6f   : > { %s1388_s4 = smov 256   ;;  %s2002_s9 = smov 8  }
  0x70   : > { %s2003_s3 = smov 128   ;;  %s2004_s15 = sld [smem:[#allocation19_spill]] }
  0x71   : > { %s2005_s6 = sld [smem:[#allocation18_spill]]  ;;  %s2006_s24 = sld [smem:[#allocation17_spill]] }
  0x72   : > { %s2007_s8 = sld [smem:[#allocation16_spill]]  ;;  %s2008_s19 = sld [smem:[#allocation15_spill]] }
  0x73   : > { %924 = dma.hbm_to_vmem [thread:$0]  (!%p1645_p2), %s1652_s5, 2048, %s1639_s13, %s1654_s26, %s1388_s4, %s2003_s3, %s2002_s9  }
  0x74   : > { %s2009_s20 = sld [smem:[#allocation14_spill]]  ;;  %s1685_s11 = sadd.s32 4294967295, %s1381_s30  }
  0x75   : > { %s749_s12 = sadd.s32 4294967294, %s1381_s30   ;;  %p64_p12 = scmp.eq.s32.totalorder %s1685_s11, 0 }
  0x76   : > { %p102_p5 = scmp.eq.s32.totalorder %s1542_s10, 0  ;;  %s104_s7 = sadd.s32 1, %s1329_s17 }
  0x77   : > { %p2010_p6 = scmp.ne.s32.totalorder %s1349_s22, %s1345_s21  ;;  %p2012_p10 = scmp.ne.s32.totalorder %s2004_s15, %s2005_s6 }
  0x78   : > { %s1706_s5 = scalar_select %p102_p5, %s1329_s17, %s104_s7  }
  0x79   : > { %p1694_p8 = por %p64_p12, %p2010_p6  ;;  %p1701_p11 = por %p2012_p10, %p64_p12 }
  0x7a   : > { %p111_p2 = scmp.ne.s32.totalorder %s1329_s17, %s2006_s24  ;;  %p117_p13 = scmp.ne.s32.totalorder %s2006_s24, %s2007_s8 }
  0x7b   : > { %s2011_s0 = scalar_select %p1694_p8, 1, 0 }
  0x7c   : > { %s2013_s13 = scalar_select %p1701_p11, 1, 0 }
  0x7d   : > { %p142_p3 = scmp.ne.s32.totalorder %s1317_s14, %s2008_s19  ;;  %p143_p1 = scmp.eq.s32.totalorder %s1685_s11, 47 }
  0x7e   : > { %p2014_p9 = scmp.eq.s32.totalorder %s1381_s30, 0  ;;  %p1717_p7 = por %p117_p13, %p64_p12 }
  0x7f   : > { %p1721_p6 = por %p143_p1, %p142_p3  ;;  %p148_p10 = scmp.ne.s32.totalorder %s2008_s19, %s2009_s20 }
  0x80   : > { %p113_p0 = por %p111_p2, %p2014_p9  ;;  %p149_p8 = scmp.eq.s32.totalorder %s749_s12, 47 }
  0x81   : > { %s2015_s21 = scalar_select %p1717_p7, 1, 0 }
  0x82   : > { %s2016_s10 = scalar_select %p1721_p6, 1, 0 }
  0x83   : > { %s217_s26 = sand.u32 1, %s1329_s17   ;;  %s760_s4 = sshll.u32 %s1373_s28, 4 }
  0x84   : > { %p1729_p5 = por %p149_p8, %p148_p10  ;;  %s2018_s6 = sld [smem:[#allocation30_spill]] }
  0x85   : > { %s218_s8 = scalar_lea.vmem [#allocation8], %s217_s26  ;;  %p2019_p12 = scmp.lt.s32.totalorder %s1381_s30, 48 }
  0x86   : > { %s2017_s9 = scalar_select %p1729_p5, 1, 0 }
  0x87   : > { %s225_s7 = sshll.u32 %s218_s8, 4  ;;  %p1740_p2 = pnand %p2019_p12, %p113_p0  ;;  %s226_s7 = int_to_ptr.vmem [resolvable:$true] %s225_s7 }
  0x89   : > { %p1159_p13 = pneg %p1740_p2 }
  0x8a   : > { %s1736_s24 = scalar_lea.hbm %s2018_s6, %s760_s4  ;;  %s1162_s26 = scalar_lea.hbm %s2018_s6, 96 }
  0x8b   : > { %s1157_s20 = scalar_lea.hbm %s1736_s24, 16  ;;  %p1163_p9 = scmp.lt.u32.totalorder %s1736_s24, %s2018_s6 }
  0x8c   : > { %p1158_p8 = scmp.ne.s32.totalorder %s1736_s24, %s1157_s20  ;;  %p1164_p0 = scmp.lt.u32.totalorder %s1162_s26, %s1157_s20 }
  0x8d   : > { %p1166_p12 = scmp.lt.u32.totalorder %s1157_s20, %s1736_s24 }
  0x8e   : > { %p1160_p3 = pnand %p1159_p13, %p1158_p8  ;;  %p1165_p10 = por %p1164_p0, %p1163_p9 }
  0x90   : > { %p1161_p1 = pneg %p1160_p3  ;;  %p1167_p5 = por %p1166_p12, %p1165_p10 }
  0x92   : > { %p1168_p6 = pnand %p1167_p5, %p1161_p1 }
  0x94   : > { %1171 = shalt.err (!%p1168_p6)
}
  0x95   : > { %s1172_s8 = scalar_lea.vmem %s226_s7, 16  ;;  %s1389_s25 = smov [#allocation8]  }
  0x96   : > { %p1173_p7 = scmp.ne.s32.totalorder %s226_s7, %s1172_s8  ;;  %s1177_s12 = sshll.u32 %s1389_s25, 4  ;;  %s1178_s12 = int_to_ptr.vmem [resolvable:$false] %s1177_s12 }
  0x97   : > { %s1179_s4 = scalar_lea.vmem %s1178_s12, 32  ;;  %p1180_p11 = scmp.lt.s32.totalorder %s226_s7, %s1178_s12 }
  0x98   : > { %p1175_p8 = pnand %p1173_p7, %p1159_p13  ;;  %p1181_p4 = scmp.lt.s32.totalorder %s1179_s4, %s1172_s8 }
  0x9a   : > { %p1176_p3 = pneg %p1175_p8  ;;  %p1182_p0 = por %p1181_p4, %p1180_p11 }
  0x9c   : > { %p1183_p9 = pnand %p1182_p0, %p1176_p3 }
  0x9e   : > { %1186 = shalt.err (!%p1183_p9)
}
  0x9f   : > { %930 = dma.hbm_to_vmem [thread:$0]  (!%p1740_p2), %s1736_s24, 16, %s226_s7, %s1570_s2  }
  0xa0   : > { %p2021_p6 = scmp.ne.s32.totalorder %s1994_s18, 0 }
  0xa1   : > { %s236_s20 = sand.u32 (!%p2021_p6), 1, %s1349_s22   ;;  %p2022_p7 = scmp.ne.s32.totalorder (!%p2021_p6), %s2011_s0, 0 }
  0xa2   : > { %234 = sbr.rel (%p2021_p6) target bundleno = 509 (0x1fd), region = 32  ;;  %s762_s26 = sshll.u32 (!%p2021_p6), %s236_s20, 7 }
  0xa3   : > { %s237_s25 = scalar_lea.sflag (!%p2021_p6), [#allocation4], %s236_s20  ;;  %s1769_s3 = scalar_lea.vmem (!%p2021_p6), [#allocation3], %s762_s26 }
  0xa9   : > { %1292 = dma.done.wait (%p2022_p7), %s237_s25, 2048  }
  0xaa   : > { %1294 = vsyncadd (%p2022_p7), %s237_s25, 4294965248  ;;  %s2023_s19 = sld [smem:[#allocation19_spill]]  ;;  %s245_s15 = sand.u32 1, %s1685_s11  }
  0xab   : > { %s246_s18 = scalar_lea.sflag [#allocation7], %s245_s15  ;;  %p2024_p4 = scmp.ne.s32.totalorder %s2013_s13, 0 }
  0xb0   : > { %s247_s2 = sand.u32 1, %s2023_s19  }
  0xb1   : > { %s763_s24 = sshll.u32 %s247_s2, 7 }
  0xb2   : > { %s1777_s7 = scalar_lea.vmem [#allocation6], %s763_s24 }
  0xb3   : > { %1296 = dma.done.wait (%p2024_p4), %s246_s18, 2048  }
  0xb4   : > { %1298 = vsyncadd (%p2024_p4), %s246_s18, 4294965248  ;;  %s2025_s8 = sld [smem:[#allocation17_spill]]  ;;  %p2026_p11 = scmp.ne.s32.totalorder %s2015_s21, 0 }
  0xba   : > { %s256_s12 = sand.u32 1, %s2025_s8  }
  0xbb   : > { %s1784_s4 = scalar_lea.vmem [#allocation8], %s256_s12 }
  0xbc   : > { %1300 = dma.done.wait (%p2026_p11), %s246_s18, 16  }
  0xbd   : > { %1302 = vsyncadd (%p2026_p11), %s246_s18, 4294967280  ;;  %s2027_s0 = sld [smem:[#allocation15_spill]]  ;;  %s2028_s25 = sld [smem:[#allocation21_spill]] }
  0xc3   : > { %s286_s11 = sand.u32 1, %s2027_s0   ;;  %p765_p5 = scmp.ne.s32.totalorder %s2028_s25, 0 }
  0xc4   : > { %s764_s20 = sshll.u32 %s286_s11, 7  ;;  %v1390_v0 = vmov (!%p765_p5), 0.0  }
  0xc5   : > { %s1793_s26 = scalar_lea.vmem [#allocation9], %s764_s20  ;;  %295 = sbr.rel (%p765_p5) target bundleno = 205 (0xcd), region = 48  ;;  %296 = vst [vmem:[#allocation2] sm:$0xff] (!%p765_p5), %v1390_v0  ;;  %297 = vst [vmem:[#allocation2 + $0x8] sm:$0xff] (!%p765_p5), %v1390_v0 }
  0xc6   : > { %298 = vst [vmem:[#allocation2 + $0x10] sm:$0xff] (!%p765_p5), %v1390_v0  ;;  %299 = vst [vmem:[#allocation2 + $0x18] sm:$0xff] (!%p765_p5), %v1390_v0 }
  0xc7   : > { %300 = vst [vmem:[#allocation2 + $0x20] sm:$0xff] (!%p765_p5), %v1390_v0  ;;  %301 = vst [vmem:[#allocation2 + $0x28] sm:$0xff] (!%p765_p5), %v1390_v0 }
  0xc8   : > { %302 = vst [vmem:[#allocation2 + $0x30] sm:$0xff] (!%p765_p5), %v1390_v0  ;;  %303 = vst [vmem:[#allocation2 + $0x38] sm:$0xff] (!%p765_p5), %v1390_v0 }
  0xc9   : > { %304 = vst [vmem:[#allocation2 + $0x40] sm:$0xff] (!%p765_p5), %v1390_v0  ;;  %305 = vst [vmem:[#allocation2 + $0x48] sm:$0xff] (!%p765_p5), %v1390_v0 }
  0xca   : > { %306 = vst [vmem:[#allocation2 + $0x50] sm:$0xff] (!%p765_p5), %v1390_v0  ;;  %307 = vst [vmem:[#allocation2 + $0x58] sm:$0xff] (!%p765_p5), %v1390_v0 }
  0xcb   : > { %308 = vst [vmem:[#allocation2 + $0x60] sm:$0xff] (!%p765_p5), %v1390_v0  ;;  %309 = vst [vmem:[#allocation2 + $0x68] sm:$0xff] (!%p765_p5), %v1390_v0 }
  0xcc   : > { %310 = vst [vmem:[#allocation2 + $0x70] sm:$0xff] %v1390_v0  ;;  %311 = vst [vmem:[#allocation2 + $0x78] sm:$0xff] %v1390_v0 }
  0xcd PF: > { %v344_v1 = vld [vmem:[%s1777_s7] sm:$0xff]  ;;  %v345_v2 = vld [vmem:[%s1777_s7 + $0x8] sm:$0xff]  ;;  %v346_v3 = vld [vmem:[%s1777_s7 + $0x10] sm:$0xff]  ;;  %s2029_s13 = sld [smem:[#allocation21_spill]] }
  0xce   : > { %v863_v4 = vpack.c.bf16 %v345_v2, %v344_v1  ;;  %v347_v5 = vld [vmem:[%s1777_s7 + $0x18] sm:$0xff]  ;;  %v348_v7 = vld [vmem:[%s1777_s7 + $0x20] sm:$0xff]  ;;  %v349_v8 = vld [vmem:[%s1777_s7 + $0x28] sm:$0xff] }
  0xcf   : > { %v867_v6 = vpack.c.bf16 %v347_v5, %v346_v3  ;;  %v871_v9 = vpack.c.bf16 %v349_v8, %v348_v7  ;;  %v328_v10 = vld [vmem:[%s1769_s3] sm:$0xff]  ;;  %v350_v12 = vld [vmem:[%s1777_s7 + $0x30] sm:$0xff]  ;;  %v351_v13 = vld [vmem:[%s1777_s7 + $0x38] sm:$0xff] }
  0xd0   : > { %864 = vmatprep.subr.bf16.mxu0 %v863_v4  ;;  %895 = vmatprep.subr.bf16.mxu1 %v863_v4  ;;  %v336_v11 = vld [vmem:[%s1769_s3 + $0x40] sm:$0xff]  ;;  %v875_v14 = vpack.c.bf16 %v351_v13, %v350_v12  ;;  %v353_v16 = vld [vmem:[%s1777_s7 + $0x48] sm:$0xff]  ;;  %v354_v18 = vld [vmem:[%s1777_s7 + $0x50] sm:$0xff] }
  0xd1   : > { %866 = vmatpush3.bf16.msra.mxu0 %v863_v4  ;;  %903 = vmatpush3.bf16.msra.mxu1 %v863_v4  ;;  %v352_v15 = vld [vmem:[%s1777_s7 + $0x40] sm:$0xff]  ;;  %v355_v19 = vld [vmem:[%s1777_s7 + $0x58] sm:$0xff]  ;;  %v357_v22 = vld [vmem:[%s1777_s7 + $0x68] sm:$0xff] }
  0xd2   : > { %868 = vmatprep.subr.bf16.mxu0 %v867_v6  ;;  %896 = vmatprep.subr.bf16.mxu1 %v867_v6  ;;  %v879_v17 = vpack.c.bf16 %v353_v16, %v352_v15  ;;  %v883_v20 = vpack.c.bf16 %v355_v19, %v354_v18  ;;  %v356_v21 = vld [vmem:[%s1777_s7 + $0x60] sm:$0xff]  ;;  %v358_v24 = vld [vmem:[%s1777_s7 + $0x70] sm:$0xff]  ;;  %v359_v25 = vld [vmem:[%s1777_s7 + $0x78] sm:$0xff] }
  0xd3   : > { %839 = vmatprep.mubr.f32.mxu0 %v328_v10  ;;  %851 = vmatprep.mubr.f32.mxu1 %v336_v11  ;;  %v887_v23 = vpack.c.bf16 %v357_v22, %v356_v21  ;;  %v891_v26 = vpack.c.bf16 %v359_v25, %v358_v24  ;;  %v329_v27 = vld [vmem:[%s1769_s3 + $0x8] sm:$0xff]  ;;  %v330_v29 = vld [vmem:[%s1769_s3 + $0x10] sm:$0xff]  ;;  %v331_v31 = vld [vmem:[%s1769_s3 + $0x18] sm:$0xff]  ;;  %p766_p2 = scmp.ne.s32.totalorder %s2029_s13, 1 }
  0xd4   : > { %v337_v28 = vld [vmem:[%s1769_s3 + $0x48] sm:$0xff]  ;;  %v338_v30 = vld [vmem:[%s1769_s3 + $0x50] sm:$0xff]  ;;  %v339_v32 = vld [vmem:[%s1769_s3 + $0x58] sm:$0xff] }
  0xd5   : > { %870 = vmatpush3.bf16.msra.mxu0 %v867_v6  ;;  %904 = vmatpush3.bf16.msra.mxu1 %v867_v6  ;;  %v332_v33 = vld [vmem:[%s1769_s3 + $0x20] sm:$0xff]  ;;  %v333_v35 = vld [vmem:[%s1769_s3 + $0x28] sm:$0xff]  ;;  %v334_v37 = vld [vmem:[%s1769_s3 + $0x30] sm:$0xff] }
  0xd6   : > { %872 = vmatprep.subr.bf16.mxu0 %v871_v9  ;;  %897 = vmatprep.subr.bf16.mxu1 %v871_v9  ;;  %v340_v34 = vld [vmem:[%s1769_s3 + $0x60] sm:$0xff]  ;;  %v341_v36 = vld [vmem:[%s1769_s3 + $0x68] sm:$0xff]  ;;  %v342_v38 = vld [vmem:[%s1769_s3 + $0x70] sm:$0xff] }
  0xd7   : > { %v335_v39 = vld [vmem:[%s1769_s3 + $0x38] sm:$0xff]  ;;  %v313_v41 = vld [vmem:[#allocation2 + $0x8] sm:$0xff]  ;;  %v312_v43 = vld [vmem:[#allocation2] sm:$0xff] }
  0xd8   : > { %v343_v40 = vld [vmem:[%s1769_s3 + $0x78] sm:$0xff]  ;;  %v321_v42 = vld [vmem:[#allocation2 + $0x48] sm:$0xff]  ;;  %v320_v44 = vld [vmem:[#allocation2 + $0x40] sm:$0xff] }
  0xd9   : > { %874 = vmatpush3.bf16.msra.mxu0 %v871_v9  ;;  %905 = vmatpush3.bf16.msra.mxu1 %v871_v9  ;;  %v315_v53 = vld [vmem:[#allocation2 + $0x18] sm:$0xff]  ;;  %v314_v55 = vld [vmem:[#allocation2 + $0x10] sm:$0xff]  ;;  %v317_v1 = vld [vmem:[#allocation2 + $0x28] sm:$0xff] }
  0xda   : > { %876 = vmatprep.subr.bf16.mxu0 %v875_v14  ;;  %898 = vmatprep.subr.bf16.mxu1 %v875_v14  ;;  %v323_v54 = vld [vmem:[#allocation2 + $0x58] sm:$0xff]  ;;  %v322_v56 = vld [vmem:[#allocation2 + $0x50] sm:$0xff]  ;;  %v325_v2 = vld [vmem:[#allocation2 + $0x68] sm:$0xff] }
  0xdb   : > { %v316_v3 = vld [vmem:[#allocation2 + $0x20] sm:$0xff]  ;;  %v319_v13 = vld [vmem:[#allocation2 + $0x38] sm:$0xff]  ;;  %v318_v15 = vld [vmem:[#allocation2 + $0x30] sm:$0xff] }
  0xdc   : > { %v324_v4 = vld [vmem:[#allocation2 + $0x60] sm:$0xff]  ;;  %v326_v16 = vld [vmem:[#allocation2 + $0x70] sm:$0xff] }
  0xdd   : > { %878 = vmatpush3.bf16.msra.mxu0 %v875_v14  ;;  %906 = vmatpush3.bf16.msra.mxu1 %v875_v14  ;;  %v327_v14 = vld [vmem:[#allocation2 + $0x78] sm:$0xff] }
  0xde   : > { %880 = vmatprep.subr.bf16.mxu0 %v879_v17  ;;  %899 = vmatprep.subr.bf16.mxu1 %v879_v17 }
  0xe1   : > { %882 = vmatpush3.bf16.msra.mxu0 %v879_v17  ;;  %907 = vmatpush3.bf16.msra.mxu1 %v879_v17 }
  0xe2   : > { %884 = vmatprep.subr.bf16.mxu0 %v883_v20  ;;  %900 = vmatprep.subr.bf16.mxu1 %v883_v20 }
  0xe5   : > { %886 = vmatpush3.bf16.msra.mxu0 %v883_v20  ;;  %908 = vmatpush3.bf16.msra.mxu1 %v883_v20 }
  0xe6   : > { %888 = vmatprep.subr.bf16.mxu0 %v887_v23  ;;  %901 = vmatprep.subr.bf16.mxu1 %v887_v23 }
  0xe9   : > { %890 = vmatpush3.bf16.msra.mxu0 %v887_v23  ;;  %909 = vmatpush3.bf16.msra.mxu1 %v887_v23 }
  0xea   : > { %892 = vmatprep.subr.bf16.mxu0 %v891_v26  ;;  %902 = vmatprep.subr.bf16.mxu1 %v891_v26 }
  0xed   : > { %894 = vmatpush3.bf16.msra.mxu0 %v891_v26  ;;  %910 = vmatpush3.bf16.msra.mxu1 %v891_v26  ;;  %v767_v26 = vld [vmem:[%s1784_s4] ss:$0 sm:$0xff] (!%p766_p2) }
  0xf0   : > { %840 = vmatmul.mubr.f32.vlgmr.msra.gmra.mrb[0].mxu0 %v329_v27  ;;  %852 = vmatmul.mubr.f32.vlgmr.msra.gmra.mrb[0].mxu1 %v337_v28 }
  0xf1   : > { %842 = vmatprep.mubr.f32.mxu0 %v330_v29  ;;  %854 = vmatprep.mubr.f32.mxu1 %v338_v30 }
  0xf4   : > { %843 = vmatmul.mubr.f32.gmra.mrb[2].mxu0 %v331_v31  ;;  %855 = vmatmul.mubr.f32.gmra.mrb[2].mxu1 %v339_v32 }
  0xf5   : > { %845 = vmatprep.mubr.f32.mxu0 %v332_v33  ;;  %857 = vmatprep.mubr.f32.mxu1 %v340_v34 }
  0xf8   : > { %846 = vmatmul.mubr.f32.gmra.mrb[4].mxu0 %v333_v35  ;;  %858 = vmatmul.mubr.f32.gmra.mrb[4].mxu1 %v341_v36 }
  0xf9   : > { %848 = vmatprep.mubr.f32.mxu0 %v334_v37  ;;  %860 = vmatprep.mubr.f32.mxu1 %v342_v38 }
  0xfc   : > { %849 = vmatmul.mubr.f32.gmra.mrb[6].mxu0 %v335_v39  ;;  %861 = vmatmul.mubr.f32.gmra.mrb[6].mxu1 %v343_v40 }
 0x1c3   : > { %v841_v45 = vpop.f32.mrb[0].mxu0  ;;  %v853_v46 = vpop.f32.mrb[0].mxu1 }
 0x1c4   : > { %v506_v47 = vadd.f32 %v841_v45, %v313_v41  ;;  %v514_v48 = vadd.f32 %v853_v46, %v321_v42  ;;  %v426_v49 = vpop.f32.mrb[1].mxu0  ;;  %v466_v50 = vpop.f32.mrb[1].mxu1 }
 0x1c5   : > { %v505_v51 = vadd.f32 %v426_v49, %v312_v43  ;;  %v513_v52 = vadd.f32 %v466_v50, %v320_v44 }
 0x1c6   : > { %522 = vst [vmem:[#allocation2 + $0x8] sm:$0xff] %v506_v47  ;;  %530 = vst [vmem:[#allocation2 + $0x48] sm:$0xff] %v514_v48 }
 0x1c7   : > { %521 = vst [vmem:[#allocation2] sm:$0xff] %v505_v51  ;;  %529 = vst [vmem:[#allocation2 + $0x40] sm:$0xff] %v513_v52  ;;  %v844_v57 = vpop.f32.mrb[2].mxu0  ;;  %v856_v58 = vpop.f32.mrb[2].mxu1 }
 0x1c8   : > { %v508_v59 = vadd.f32 %v844_v57, %v315_v53  ;;  %v516_v60 = vadd.f32 %v856_v58, %v323_v54  ;;  %v436_v61 = vpop.f32.mrb[3].mxu0  ;;  %v476_v62 = vpop.f32.mrb[3].mxu1 }
 0x1c9   : > { %v507_v63 = vadd.f32 %v436_v61, %v314_v55  ;;  %v515_v0 = vadd.f32 %v476_v62, %v322_v56 }
 0x1ca   : > { %524 = vst [vmem:[#allocation2 + $0x18] sm:$0xff] %v508_v59  ;;  %532 = vst [vmem:[#allocation2 + $0x58] sm:$0xff] %v516_v60 }
 0x1cb   : > { %523 = vst [vmem:[#allocation2 + $0x10] sm:$0xff] %v507_v63  ;;  %531 = vst [vmem:[#allocation2 + $0x50] sm:$0xff] %v515_v0  ;;  %v847_v5 = vpop.f32.mrb[4].mxu0  ;;  %v859_v6 = vpop.f32.mrb[4].mxu1 }
 0x1cc   : > { %v510_v7 = vadd.f32 %v847_v5, %v317_v1  ;;  %v518_v8 = vadd.f32 %v859_v6, %v325_v2  ;;  %v446_v9 = vpop.f32.mrb[5].mxu0  ;;  %v486_v10 = vpop.f32.mrb[5].mxu1 }
 0x1cd   : > { %v509_v11 = vadd.f32 %v446_v9, %v316_v3  ;;  %v517_v12 = vadd.f32 %v486_v10, %v324_v4  ;;  %540 = sbr.rel (%p766_p2) target bundleno = 479 (0x1df), region = 52  ;;  %v542_v27 = vld [vmem:[#allocation2 + $0x8] sm:$0xff] (!%p766_p2) }
 0x1ce   : > { %526 = vst [vmem:[#allocation2 + $0x28] sm:$0xff] %v510_v7  ;;  %534 = vst [vmem:[#allocation2 + $0x68] sm:$0xff] %v518_v8  ;;  %v541_v25 = vld [vmem:[#allocation2] sm:$0xff] (!%p766_p2)  ;;  %v565_v29 = vadd.f32 (!%p766_p2), %v767_v26, %v542_v27  ;;  %v550_v43 = vld [vmem:[#allocation2 + $0x48] sm:$0xff] (!%p766_p2) }
 0x1cf   : > { %525 = vst [vmem:[#allocation2 + $0x20] sm:$0xff] %v509_v11  ;;  %533 = vst [vmem:[#allocation2 + $0x60] sm:$0xff] %v517_v12  ;;  %v850_v17 = vpop.f32.mrb[6].mxu0  ;;  %v862_v18 = vpop.f32.mrb[6].mxu1  ;;  %v564_v28 = vadd.f32 (!%p766_p2), %v767_v26, %v541_v25  ;;  %v549_v42 = vld [vmem:[#allocation2 + $0x40] sm:$0xff] (!%p766_p2)  ;;  %v573_v46 = vadd.f32 (!%p766_p2), %v767_v26, %v550_v43 }
 0x1d0   : > { %v512_v19 = vadd.f32 %v850_v17, %v319_v13  ;;  %v520_v20 = vadd.f32 %v862_v18, %v327_v14  ;;  %v456_v21 = vpop.f32.mrb[7].mxu0  ;;  %v496_v22 = vpop.f32.mrb[7].mxu1  ;;  %581 = vst [vmem:[%s1793_s26 + $0x8] sm:$0xff] (!%p766_p2), %v565_v29  ;;  %v572_v45 = vadd.f32 (!%p766_p2), %v767_v26, %v549_v42 }
 0x1d1   : > { %v511_v23 = vadd.f32 %v456_v21, %v318_v15  ;;  %v519_v24 = vadd.f32 %v496_v22, %v326_v16  ;;  %v544_v31 = vld [vmem:[#allocation2 + $0x18] sm:$0xff] (!%p766_p2)  ;;  %580 = vst [vmem:[%s1793_s26] sm:$0xff] (!%p766_p2), %v564_v28  ;;  %589 = vst [vmem:[%s1793_s26 + $0x48] sm:$0xff] (!%p766_p2), %v573_v46 }
 0x1d2   : > { %528 = vst [vmem:[#allocation2 + $0x38] sm:$0xff] %v512_v19  ;;  %536 = vst [vmem:[#allocation2 + $0x78] sm:$0xff] %v520_v20  ;;  %v543_v30 = vld [vmem:[#allocation2 + $0x10] sm:$0xff] (!%p766_p2)  ;;  %v567_v34 = vadd.f32 (!%p766_p2), %v767_v26, %v544_v31  ;;  %v552_v48 = vld [vmem:[#allocation2 + $0x58] sm:$0xff] (!%p766_p2) }
 0x1d3   : > { %527 = vst [vmem:[#allocation2 + $0x30] sm:$0xff] %v511_v23  ;;  %535 = vst [vmem:[#allocation2 + $0x70] sm:$0xff] %v519_v24  ;;  %v566_v33 = vadd.f32 (!%p766_p2), %v767_v26, %v543_v30  ;;  %v551_v44 = vld [vmem:[#allocation2 + $0x50] sm:$0xff] (!%p766_p2)  ;;  %v575_v51 = vadd.f32 (!%p766_p2), %v767_v26, %v552_v48 }
 0x1d4   : > { %583 = vst [vmem:[%s1793_s26 + $0x18] sm:$0xff] %v567_v34  ;;  %v574_v47 = vadd.f32 %v767_v26, %v551_v44  ;;  %588 = vst [vmem:[%s1793_s26 + $0x40] sm:$0xff] %v572_v45 }
 0x1d5   : > { %v546_v36 = vld [vmem:[#allocation2 + $0x28] sm:$0xff]  ;;  %582 = vst [vmem:[%s1793_s26 + $0x10] sm:$0xff] %v566_v33  ;;  %591 = vst [vmem:[%s1793_s26 + $0x58] sm:$0xff] %v575_v51 }
 0x1d6   : > { %v545_v32 = vld [vmem:[#allocation2 + $0x20] sm:$0xff]  ;;  %v569_v39 = vadd.f32 %v767_v26, %v546_v36  ;;  %v554_v50 = vld [vmem:[#allocation2 + $0x68] sm:$0xff]  ;;  %590 = vst [vmem:[%s1793_s26 + $0x50] sm:$0xff] %v574_v47 }
 0x1d7   : > { %v568_v35 = vadd.f32 %v767_v26, %v545_v32  ;;  %v553_v49 = vld [vmem:[#allocation2 + $0x60] sm:$0xff]  ;;  %v577_v53 = vadd.f32 %v767_v26, %v554_v50 }
 0x1d8   : > { %585 = vst [vmem:[%s1793_s26 + $0x28] sm:$0xff] %v569_v39  ;;  %v576_v52 = vadd.f32 %v767_v26, %v553_v49 }
 0x1d9   : > { %v548_v38 = vld [vmem:[#allocation2 + $0x38] sm:$0xff]  ;;  %584 = vst [vmem:[%s1793_s26 + $0x20] sm:$0xff] %v568_v35  ;;  %593 = vst [vmem:[%s1793_s26 + $0x68] sm:$0xff] %v577_v53 }
 0x1da   : > { %v547_v37 = vld [vmem:[#allocation2 + $0x30] sm:$0xff]  ;;  %v571_v41 = vadd.f32 %v767_v26, %v548_v38  ;;  %v556_v55 = vld [vmem:[#allocation2 + $0x78] sm:$0xff]  ;;  %592 = vst [vmem:[%s1793_s26 + $0x60] sm:$0xff] %v576_v52 }
 0x1db   : > { %v570_v40 = vadd.f32 %v767_v26, %v547_v37  ;;  %v555_v54 = vld [vmem:[#allocation2 + $0x70] sm:$0xff]  ;;  %v579_v57 = vadd.f32 %v767_v26, %v556_v55 }
 0x1dc   : > { %587 = vst [vmem:[%s1793_s26 + $0x38] sm:$0xff] %v571_v41  ;;  %v578_v56 = vadd.f32 %v767_v26, %v555_v54 }
 0x1dd   : > { %586 = vst [vmem:[%s1793_s26 + $0x30] sm:$0xff] %v570_v40  ;;  %595 = vst [vmem:[%s1793_s26 + $0x78] sm:$0xff] %v579_v57 }
 0x1de   : > { %594 = vst [vmem:[%s1793_s26 + $0x70] sm:$0xff] %v578_v56 }
 0x1df PF: > { %s2030_s21 = sld [smem:[#allocation23_spill]]  ;;  %s2031_s3 = sld [smem:[#allocation22_spill]] }
 0x1e0   : > { %s612_s2 = sshll.u32 %s1793_s26, 4  ;;  %s2033_s12 = sld [smem:[#allocation31_spill]]  ;;  %s1849_s2 = int_to_ptr.vmem [resolvable:$true] %s612_s2 }
 0x1e1   : > { %s1858_s20 = scalar_lea.sflag [#allocation5], %s286_s11  ;;  %s1187_s25 = scalar_lea.vmem %s1849_s2, 2048 }
 0x1e2   : > { %p1188_p13 = scmp.ne.s32.totalorder %s1849_s2, %s1187_s25  ;;  %p2035_p1 = scmp.ne.s32.totalorder %s2016_s10, 0 }
 0x1e3   : > { %s1391_s26 = smov [#allocation9]  }
 0x1e4   : > { %p1189_p10 = pnand %p1188_p13, %p2035_p1  ;;  %s1191_s13 = sshll.u32 %s1391_s26, 4  ;;  %s1192_s13 = int_to_ptr.vmem [resolvable:$false] %s1191_s13 }
 0x1e5   : > { %s912_s15 = smul.u32 96, %s2030_s21  ;;  %s1193_s21 = scalar_lea.vmem %s1192_s13, 4096 }
 0x1e6   : > { %s2034_s4 = smov %s2033_s12  ;;  %p1190_p12 = pneg %p1189_p10 }
 0x1e7   : > { %s609_s24 = sadd.s32 %s2031_s3, %s912_s15  ;;  %p1194_p8 = scmp.lt.s32.totalorder %s1849_s2, %s1192_s13 }
 0x1e8   : > { %s771_s18 = sshll.u32 %s609_s24, 7  ;;  %p1195_p3 = scmp.lt.s32.totalorder %s1193_s21, %s1187_s25 }
 0x1e9   : > { %s1854_s0 = scalar_lea.hbm %s2033_s12, %s771_s18 }
 0x1ea   : > { %p1196_p0 = por %p1195_p3, %p1194_p8 }
 0x1ec   : > { %p1197_p9 = pnand %p1196_p0, %p1190_p12 }
 0x1ee   : > { %1200 = shalt.err (!%p1197_p9)
}
 0x1ef   : > { %s1201_s11 = scalar_lea.hbm %s1854_s0, 2048  ;;  %s1205_s15 = scalar_lea.hbm %s2034_s4, 49152 }
 0x1f0   : > { %p1202_p6 = scmp.ne.s32.totalorder %s1854_s0, %s1201_s11  ;;  %p1206_p11 = scmp.lt.u32.totalorder %s1854_s0, %s2034_s4 }
 0x1f1   : > { %p1207_p5 = scmp.lt.u32.totalorder %s1205_s15, %s1201_s11  ;;  %p1209_p13 = scmp.lt.u32.totalorder %s1201_s11, %s1854_s0 }
 0x1f2   : > { %p1203_p7 = pnand %p1202_p6, %p2035_p1 }
 0x1f3   : > { %p1208_p2 = por %p1207_p5, %p1206_p11 }
 0x1f4   : > { %p1204_p4 = pneg %p1203_p7 }
 0x1f5   : > { %p1210_p10 = por %p1209_p13, %p1208_p2 }
 0x1f7   : > { %p1211_p12 = pnand %p1210_p10, %p1204_p4 }
 0x1f9   : > { %1214 = shalt.err (!%p1211_p12)
}
 0x1fa   : > { %s1392_s7 = smov 128   ;;  %s1393_s8 = smov 768  }
 0x1fb   : > { %s1394_s12 = smov 8  }
 0x1fc   : > { %919 = dma.vmem_to_hbm [thread:$0]  (%p2035_p1), %s1849_s2, 2048, %s1854_s0, %s1858_s20, %s1392_s7, %s1393_s8, %s1394_s12  }
 0x1fd PF: > { %s2036_s25 = sld [smem:[#allocation14_spill]]  ;;  %p936_p8 = scmp.ge.s32.totalorder %s1381_s30, 2 }
 0x1fe   : > { %p2037_p3 = scmp.ne.s32.totalorder %s2017_s9, 0 }
 0x200   : > { %p932_p0 = pnand %p936_p8, %p2037_p3 }
 0x203   : > { %s627_s26 = sand.u32 1, %s2036_s25  }
 0x204   : > { %s628_s13 = scalar_lea.sflag [#allocation5], %s627_s26 }
 0x205   : > { %1304 = dma.done.wait (!%p932_p0), %s628_s13, 2048  }
 0x206   : > { %1306 = vsyncadd (!%p932_p0), %s628_s13, 4294965248  ;;  %s22_s30 = sadd.s32 1, %s1381_s30   ;;  %s2039_s12 = sld [smem:[#allocation15_spill]] }
 0x207   : > { %p1887_p9 = scmp.ge.s32.totalorder %s22_s30, 50   ;;  %s2040_s15 = sld [smem:[#allocation17_spill]] }
 0x208   : > { %s2041_s18 = sld [smem:[#allocation19_spill]]  ;;  %s2042_s19 = sld [smem:[#allocation20_spill]] }
 0x209   : > { %s2043_s20 = sld [smem:[#allocation26_spill]]  ;;  %s2044_s10 = smov %s1633_s16 }
 0x20a   : > { %s2045_s9 = sld [smem:[#allocation24_spill]]  ;;  %s2046_s2 = sld [smem:[#allocation25_spill]] }
 0x20b   : > { %s2047_s13 = smov %s1317_s14  ;;  %s2048_s0 = sld [smem:[#allocation27_spill]] }
 0x20c   : > { %s2049_s14 = smov %s1636_s1  ;;  %s2051_s16 = smov %s1329_s17 }
 0x20d   : > { %s2052_s17 = smov %s1706_s5  ;;  %s2053_s21 = smov %s1349_s22 }
 0x20e   : > { %s2054_s22 = smov %s1353_s23  ;;  %s2055_s23 = smov %s2044_s10 }
 0x20f   : > { %s2056_s24 = smov %s1369_s27  ;;  %s2057_s25 = smov %s1373_s28 }
 0x210   : > { %s2058_s26 = smov %s1377_s29  ;;  %s2059_s27 = smov %s2045_s9 }
 0x211   : > { %s2060_s28 = smov %s2046_s2  ;;  %s2061_s29 = smov %s2048_s0 }
 0x212   :  { %21 = sbr.rel (!%p1887_p9) target bundleno = 20 (0x14), region = 109 }
 0x219   :  { %633 = vsyncpa [#allocation4], 1 }
 0x21a   :  { %635 = vsyncpa [#allocation4 + $0x1], 1 }
 0x21b   :  { %636 = vsyncpa [#allocation7], 1 }
 0x21c   :  { %638 = vsyncpa [#allocation7 + $0x1], 1 }
 0x21d   :  { %639 = vsyncpa [#allocation5], 1 }
 0x21e   :  { %641 = vsyncpa [#allocation5 + $0x1], 1 }

</bundles_post_ra>
